<compile_context>
chip_gen: v7x
topology: tpu7x:2x2x1
jax: 0.10.0
libtpu: 0.0.40
codegen_flags: <defaults>
</compile_context>

<pallas_src>
import functools

import jax
import jax.numpy as jnp
from jax import lax
from jax.experimental import pallas as pl
from jax.experimental.pallas import tpu as pltpu

_NUM_SUMS = 11   # valid-count + 10 masked partial sums
_LANES = 128


def _sublane_multiple(dtype):
    # Minimum sublane granularity for a dense tile of this dtype.
    return max(8, 32 // jnp.dtype(dtype).itemsize)


def _metrics_kernel(o_ref, t_ref, acc_ref, *, n_inner, tm, chunk, n_chunks, rows):
    outer = pl.program_id(0)
    inner = pl.program_id(1)

    # acc_ref is this outer-index's partial-sum block; it stays resident in
    # VMEM across the inner ("arbitrary") axis.  Zero it at sweep start.
    @pl.when(inner == 0)
    def _():
        acc_ref[...] = jnp.zeros_like(acc_ref)

    # Global row index of the first row of this tile (UNclamped, so clamped
    # duplicate boundary blocks and Pallas-padded rows fall out of bounds and
    # are masked away below).
    row_base = (outer * n_inner + inner) * tm
    row_iota = lax.broadcasted_iota(jnp.int32, (chunk, _LANES), 0)

    def body(c, accs):
        r0 = pl.multiple_of(c * chunk, chunk)
        o = o_ref[pl.ds(r0, chunk), :].astype(jnp.float32)
        t = t_ref[pl.ds(r0, chunk), :].astype(jnp.float32)

        in_bounds = row_iota < (rows - row_base - r0)
        valid = jnp.logical_and(t > 0.001, in_bounds)          # valid_mask
        mask_f = valid.astype(jnp.float32)

        # Safe values on invalid lanes: all diffs / logs / inverse diffs are
        # exactly zero there, so only the count and the delta hits need care.
        safe_o = jnp.where(valid, o, 1.0)
        safe_t = jnp.where(valid, t, 1.0)

        diff = safe_o - safe_t
        abs_diff = jnp.abs(diff)
        sq_diff = diff * diff

        r_o = pl.reciprocal(safe_o)
        r_t = pl.reciprocal(safe_t)

        log_diff = jnp.log(safe_t * r_o)                        # ln(t) - ln(o)
        ratio = jnp.maximum(safe_o * r_t, safe_t * r_o)         # max(o/t, t/o)
        ratio = jnp.where(valid, ratio, 2.0)                    # no fake delta hit
        inv_diff = jnp.abs(r_o - r_t)                           # *1000 in wrapper

        vals = (
            mask_f,                                   # 0: valid count
            sq_diff,                                  # 1: sum (o-t)^2
            abs_diff,                                 # 2: sum |o-t|
            log_diff * log_diff,                      # 3: sum (ln t - ln o)^2
            abs_diff * r_t,                           # 4: sum |o-t| / t
            sq_diff * r_t,                            # 5: sum (o-t)^2 / t
            (ratio < 1.25).astype(jnp.float32),       # 6: delta1 hits
            (ratio < 1.25 ** 2).astype(jnp.float32),  # 7: delta2 hits
            (ratio < 1.25 ** 3).astype(jnp.float32),  # 8: delta3 hits
            inv_diff * inv_diff,                      # 9: sum |1/o - 1/t|^2
            inv_diff,                                 # 10: sum |1/o - 1/t|
        )
        return tuple(a + v for a, v in zip(accs, vals))

    init = tuple(acc_ref[0, k] for k in range(_NUM_SUMS))
    accs = lax.fori_loop(0, n_chunks, body, init)
    for k in range(_NUM_SUMS):
        acc_ref[0, k] = accs[k]


def others_metrics(outputs, target, *, tm=1024):
    """Returns (rmse, mae, absrel, delta1, delta2, delta3, irmse, imae,
    squared_rel, rmse_log), exactly as OTHERS.forward does."""
    o = outputs.reshape(-1)
    t = target.reshape(-1)
    if o.dtype not in (jnp.float32, jnp.bfloat16, jnp.float16):
        o = o.astype(jnp.float32)
    if t.dtype not in (jnp.float32, jnp.bfloat16, jnp.float16):
        t = t.astype(jnp.float32)

    n = o.shape[0]
    n128 = pl.cdiv(n, _LANES) * _LANES
    if n128 != n:
        # Only pad to the 128-lane boundary; padded target==0 is invalid.
        o = jnp.pad(o, (0, n128 - n))
        t = jnp.pad(t, (0, n128 - n))
    rows = n128 // _LANES
    o2 = o.reshape(rows, _LANES)
    t2 = t.reshape(rows, _LANES)

    mult = max(_sublane_multiple(o2.dtype), _sublane_multiple(t2.dtype))
    chunk = mult
    tm_round = max(mult, (tm // mult) * mult)
    tm_eff = min(tm_round, pl.cdiv(rows, mult) * mult)
    n_chunks = tm_eff // chunk

    total_blocks = pl.cdiv(rows, tm_eff)
    n_outer = 2 if total_blocks >= 2 else 1     # per-core partials on v7x
    n_inner = pl.cdiv(total_blocks, n_outer)

    def in_map(oi, ii):
        # Clamp so the DMA never targets a fully out-of-range block; the
        # kernel's row-bound mask drops contributions of clamped duplicates.
        return (jnp.minimum(oi * n_inner + ii, total_blocks - 1), 0)

    kernel = functools.partial(
        _metrics_kernel,
        n_inner=n_inner, tm=tm_eff, chunk=chunk, n_chunks=n_chunks, rows=rows)

    partials = pl.pallas_call(
        kernel,
        out_shape=jax.ShapeDtypeStruct((n_outer, _NUM_SUMS, chunk, _LANES),
                                       jnp.float32),
        grid=(n_outer, n_inner),
        in_specs=[
            pl.BlockSpec((tm_eff, _LANES), in_map),
            pl.BlockSpec((tm_eff, _LANES), in_map),
        ],
        out_specs=pl.BlockSpec((1, _NUM_SUMS, chunk, _LANES),
                               lambda oi, ii: (oi, 0, 0, 0)),
        compiler_params=pltpu.CompilerParams(
            dimension_semantics=("parallel", "arbitrary")),
    )(o2, t2)

    sums = jnp.sum(partials, axis=(0, 2, 3))    # (11,)

    # NOTE: if no pixel has target > 0.001, count == 0 and the metrics are
    # NaN — identical to the PyTorch reference behavior.
    count = sums[0]
    mse = sums[1] / count
    rmse = jnp.sqrt(mse)
    mae = sums[2] / count
    rmse_log = jnp.sqrt(sums[3] / count)
    absrel = sums[4] / count
    squared_rel = sums[5] / count
    delta1 = sums[6] / count
    delta2 = sums[7] / count
    delta3 = sums[8] / count
    irmse = 1000.0 * jnp.sqrt(sums[9] / count)   # (0.001*x)^-1 = 1000/x
    imae = 1000.0 * (sums[10] / count)
    return (rmse, mae, absrel, delta1, delta2, delta3, irmse, imae,
            squared_rel, rmse_log)


def _reference_metrics(outputs, target):
    """Pure-JAX reference mirroring the PyTorch forward, for sanity check."""
    mask = target > 0.001
    o = outputs[mask].astype(jnp.float32)
    t = target[mask].astype(jnp.float32)
    abs_diff = jnp.abs(o - t)
    mse = jnp.mean(abs_diff ** 2)
    rmse = jnp.sqrt(mse)
    rmse_log = jnp.sqrt(jnp.mean((jnp.log(t) - jnp.log(o)) ** 2))
    mae = jnp.mean(abs_diff)
    absrel = jnp.mean(abs_diff / t)
    squared_rel = jnp.mean(abs_diff ** 2 / t)
    max_ratio = jnp.maximum(o / t, t / o)
    d1 = jnp.mean((max_ratio < 1.25).astype(jnp.float32))
    d2 = jnp.mean((max_ratio < 1.25 ** 2).astype(jnp.float32))
    d3 = jnp.mean((max_ratio < 1.25 ** 3).astype(jnp.float32))
    inv_o = (0.001 * o) ** (-1)
    inv_t = (0.001 * t) ** (-1)
    abs_inv = jnp.abs(inv_o - inv_t)
    irmse = jnp.sqrt(jnp.mean(abs_inv ** 2))
    imae = jnp.mean(abs_inv)
    return (rmse, mae, absrel, d1, d2, d3, irmse, imae, squared_rel, rmse_log)


def _check(outputs, target, **kw):
    got = jax.block_until_ready(others_metrics(outputs, target, **kw))
    want = _reference_metrics(outputs, target)
    for g, w in zip(got, want):
        g, w = float(g), float(w)
        assert abs(g - w) <= 1e-3 * (1.0 + abs(w)), (g, w)


if __name__ == "__main__":
    key = jax.random.PRNGKey(0)

    # Primary case: NCHW (2, 4, 16, 16) with ~30% invalid target pixels.
    k_o, k_t, k_m, key = jax.random.split(key, 4)
    shape = (2, 4, 16, 16)
    outputs = jax.random.uniform(k_o, shape, jnp.float32, 0.1, 10.0)
    target = jax.random.uniform(k_t, shape, jnp.float32, 0.1, 10.0)
    target = jnp.where(jax.random.uniform(k_m, shape) < 0.3, 0.0, target)
    _check(outputs, target)

    # Multi-block case (small tm so the (parallel, arbitrary) grid is >1x1).
    k_o, k_t, k_m, key = jax.random.split(key, 4)
    shape = (2, 4, 32, 32)
    outputs = jax.random.uniform(k_o, shape, jnp.float32, 0.1, 10.0)
    target = jax.random.uniform(k_t, shape, jnp.float32, 0.1, 10.0)
    target = jnp.where(jax.random.uniform(k_m, shape) < 0.3, 0.0, target)
    _check(outputs, target, tm=16)

    # Ragged case: element count not a multiple of 128, odd block count
    # (exercises the clamped boundary block and the in-kernel row mask).
    k_o, k_t, k_m, key = jax.random.split(key, 4)
    shape = (1, 3, 30, 31)
    outputs = jax.random.uniform(k_o, shape, jnp.float32, 0.1, 10.0)
    target = jax.random.uniform(k_t, shape, jnp.float32, 0.1, 10.0)
    target = jnp.where(jax.random.uniform(k_m, shape) < 0.3, 0.0, target)
    _check(outputs, target, tm=8)

    print("KERNEL_OK")
</pallas_src>

<mosaic_0001>
module attributes {stable_mosaic.version = 11 : i64} {
  func.func @_metrics_kernel(%arg0: i32, %arg1: i32, %arg2: memref<16x128xf32, #tpu.memory_space<vmem>>, %arg3: memref<16x128xf32, #tpu.memory_space<vmem>>, %arg4: memref<1x11x8x128xf32, #tpu.memory_space<vmem>>) attributes {dimension_semantics = [#tpu.dimension_semantics<parallel>, #tpu.dimension_semantics<arbitrary>], iteration_bounds = array<i64: 1, 1>, scalar_prefetch = 0 : i64, scratch_operands = 0 : i64, tpu.core_type = #tpu.core_type<tc>, window_params = [{transform_indices = @transform_0, window_bounds = array<i64: 16, 128>}, {transform_indices = @transform_1, window_bounds = array<i64: 16, 128>}, {transform_indices = @transform_2, window_bounds = array<i64: 1, 11, 8, 128>}]} {
    %c0_i32 = arith.constant 0 : i32
    %0 = arith.cmpi eq, %arg1, %c0_i32 : i32
    %1 = arith.extui %0 : i1 to i32
    %c0_i32_0 = arith.constant 0 : i32
    %2 = arith.cmpi ne, %1, %c0_i32_0 : i32
    scf.if %2 {
      %cst = arith.constant 0.000000e+00 : f32
      %64 = vector.broadcast %cst : f32 to vector<1x11x8x128xf32>
      %c0_81 = arith.constant 0 : index
      %c0_82 = arith.constant 0 : index
      %c0_83 = arith.constant 0 : index
      %c0_84 = arith.constant 0 : index
      %65 = vector.load %arg4[%c0_81, %c0_82, %c0_83, %c0_84] : memref<1x11x8x128xf32, #tpu.memory_space<vmem>>, vector<1x11x8x128xf32>
      tpu.vector_store %arg4[%c0_81, %c0_82, %c0_83, %c0_84], %64 {strides = array<i32>} : memref<1x11x8x128xf32, #tpu.memory_space<vmem>>, vector<1x11x8x128xf32>,
    } else {
    }
    %c1_i32 = arith.constant 1 : i32
    %3 = arith.muli %arg0, %c1_i32 : i32
    %4 = arith.addi %3, %arg1 : i32
    %c16_i32 = arith.constant 16 : i32
    %5 = arith.muli %4, %c16_i32 : i32
    %6 = tpu.iota {dimensions = array<i32: 0>} : vector<8x128xi32>
    %c0 = arith.constant 0 : index
    %c0_1 = arith.constant 0 : index
    %c0_2 = arith.constant 0 : index
    %c0_3 = arith.constant 0 : index
    %7 = vector.load %arg4[%c0, %c0_1, %c0_2, %c0_3] : memref<1x11x8x128xf32, #tpu.memory_space<vmem>>, vector<1x1x8x128xf32>
    %8 = vector.shape_cast %7 : vector<1x1x8x128xf32> to vector<8x128xf32>
    %c0_4 = arith.constant 0 : index
    %c1 = arith.constant 1 : index
    %c0_5 = arith.constant 0 : index
    %c0_6 = arith.constant 0 : index
    %9 = vector.load %arg4[%c0_4, %c1, %c0_5, %c0_6] : memref<1x11x8x128xf32, #tpu.memory_space<vmem>>, vector<1x1x8x128xf32>
    %10 = vector.shape_cast %9 : vector<1x1x8x128xf32> to vector<8x128xf32>
    %c0_7 = arith.constant 0 : index
    %c2 = arith.constant 2 : index
    %c0_8 = arith.constant 0 : index
    %c0_9 = arith.constant 0 : index
    %11 = vector.load %arg4[%c0_7, %c2, %c0_8, %c0_9] : memref<1x11x8x128xf32, #tpu.memory_space<vmem>>, vector<1x1x8x128xf32>
    %12 = vector.shape_cast %11 : vector<1x1x8x128xf32> to vector<8x128xf32>
    %c0_10 = arith.constant 0 : index
    %c3 = arith.constant 3 : index
    %c0_11 = arith.constant 0 : index
    %c0_12 = arith.constant 0 : index
    %13 = vector.load %arg4[%c0_10, %c3, %c0_11, %c0_12] : memref<1x11x8x128xf32, #tpu.memory_space<vmem>>, vector<1x1x8x128xf32>
    %14 = vector.shape_cast %13 : vector<1x1x8x128xf32> to vector<8x128xf32>
    %c0_13 = arith.constant 0 : index
    %c4 = arith.constant 4 : index
    %c0_14 = arith.constant 0 : index
    %c0_15 = arith.constant 0 : index
    %15 = vector.load %arg4[%c0_13, %c4, %c0_14, %c0_15] : memref<1x11x8x128xf32, #tpu.memory_space<vmem>>, vector<1x1x8x128xf32>
    %16 = vector.shape_cast %15 : vector<1x1x8x128xf32> to vector<8x128xf32>
    %c0_16 = arith.constant 0 : index
    %c5 = arith.constant 5 : index
    %c0_17 = arith.constant 0 : index
    %c0_18 = arith.constant 0 : index
    %17 = vector.load %arg4[%c0_16, %c5, %c0_17, %c0_18] : memref<1x11x8x128xf32, #tpu.memory_space<vmem>>, vector<1x1x8x128xf32>
    %18 = vector.shape_cast %17 : vector<1x1x8x128xf32> to vector<8x128xf32>
    %c0_19 = arith.constant 0 : index
    %c6 = arith.constant 6 : index
    %c0_20 = arith.constant 0 : index
    %c0_21 = arith.constant 0 : index
    %19 = vector.load %arg4[%c0_19, %c6, %c0_20, %c0_21] : memref<1x11x8x128xf32, #tpu.memory_space<vmem>>, vector<1x1x8x128xf32>
    %20 = vector.shape_cast %19 : vector<1x1x8x128xf32> to vector<8x128xf32>
    %c0_22 = arith.constant 0 : index
    %c7 = arith.constant 7 : index
    %c0_23 = arith.constant 0 : index
    %c0_24 = arith.constant 0 : index
    %21 = vector.load %arg4[%c0_22, %c7, %c0_23, %c0_24] : memref<1x11x8x128xf32, #tpu.memory_space<vmem>>, vector<1x1x8x128xf32>
    %22 = vector.shape_cast %21 : vector<1x1x8x128xf32> to vector<8x128xf32>
    %c0_25 = arith.constant 0 : index
    %c8 = arith.constant 8 : index
    %c0_26 = arith.constant 0 : index
    %c0_27 = arith.constant 0 : index
    %23 = vector.load %arg4[%c0_25, %c8, %c0_26, %c0_27] : memref<1x11x8x128xf32, #tpu.memory_space<vmem>>, vector<1x1x8x128xf32>
    %24 = vector.shape_cast %23 : vector<1x1x8x128xf32> to vector<8x128xf32>
    %c0_28 = arith.constant 0 : index
    %c9 = arith.constant 9 : index
    %c0_29 = arith.constant 0 : index
    %c0_30 = arith.constant 0 : index
    %25 = vector.load %arg4[%c0_28, %c9, %c0_29, %c0_30] : memref<1x11x8x128xf32, #tpu.memory_space<vmem>>, vector<1x1x8x128xf32>
    %26 = vector.shape_cast %25 : vector<1x1x8x128xf32> to vector<8x128xf32>
    %c0_31 = arith.constant 0 : index
    %c10 = arith.constant 10 : index
    %c0_32 = arith.constant 0 : index
    %c0_33 = arith.constant 0 : index
    %27 = vector.load %arg4[%c0_31, %c10, %c0_32, %c0_33] : memref<1x11x8x128xf32, #tpu.memory_space<vmem>>, vector<1x1x8x128xf32>
    %28 = vector.shape_cast %27 : vector<1x1x8x128xf32> to vector<8x128xf32>
    %c0_i32_34 = arith.constant 0 : i32
    %c2_i32 = arith.constant 2 : i32
    %29 = arith.addi %c0_i32_34, %c2_i32 : i32
    %c1_i32_35 = arith.constant 1 : i32
    %30:11 = scf.for %arg5 = %c0_i32_34 to %29 step %c1_i32_35 iter_args(%arg6 = %8, %arg7 = %10, %arg8 = %12, %arg9 = %14, %arg10 = %16, %arg11 = %18, %arg12 = %20, %arg13 = %22, %arg14 = %24, %arg15 = %26, %arg16 = %28) -> (vector<8x128xf32>, vector<8x128xf32>, vector<8x128xf32>, vector<8x128xf32>, vector<8x128xf32>, vector<8x128xf32>, vector<8x128xf32>, vector<8x128xf32>, vector<8x128xf32>, vector<8x128xf32>, vector<8x128xf32>)  : i32 {
      %c8_i32 = arith.constant 8 : i32
      %64 = arith.muli %arg5, %c8_i32 : i32
      %65 = tpu.assume_multiple %64, 8 : i32
      %66 = arith.index_cast %65 : i32 to index
      %c0_81 = arith.constant 0 : index
      %67 = vector.load %arg2[%66, %c0_81] : memref<16x128xf32, #tpu.memory_space<vmem>>, vector<8x128xf32>
      %68 = arith.index_cast %65 : i32 to index
      %c0_82 = arith.constant 0 : index
      %69 = vector.load %arg3[%68, %c0_82] : memref<16x128xf32, #tpu.memory_space<vmem>>, vector<8x128xf32>
      %c16_i32_83 = arith.constant 16 : i32
      %70 = arith.subi %c16_i32_83, %5 : i32
      %71 = arith.subi %70, %65 : i32
      %72 = vector.broadcast %71 : i32 to vector<8x128xi32>
      %73 = arith.cmpi slt, %6, %72 : vector<8x128xi32>
      %cst = arith.constant 1.000000e-03 : f32
      %74 = vector.broadcast %cst : f32 to vector<8x128xf32>
      %75 = arith.cmpf ogt, %69, %74 : vector<8x128xf32>
      %76 = arith.andi %75, %73 : vector<8x128xi1>
      %77 = arith.extui %76 : vector<8x128xi1> to vector<8x128xi32>
      %78 = arith.sitofp %77 : vector<8x128xi32> to vector<8x128xf32>
      %cst_84 = arith.constant 1.000000e+00 : f32
      %79 = vector.broadcast %cst_84 : f32 to vector<8x128xf32>
      %80 = arith.select %76, %67, %79 : vector<8x128xi1>, vector<8x128xf32>
      %cst_85 = arith.constant 1.000000e+00 : f32
      %81 = vector.broadcast %cst_85 : f32 to vector<8x128xf32>
      %82 = arith.select %76, %69, %81 : vector<8x128xi1>, vector<8x128xf32>
      %83 = arith.subf %80, %82 : vector<8x128xf32>
      %84 = math.absf %83 : vector<8x128xf32>
      %85 = arith.mulf %83, %83 : vector<8x128xf32>
      %86 = tpu.reciprocal %80 : vector<8x128xf32> -> vector<8x128xf32>
      %87 = tpu.reciprocal %82 : vector<8x128xf32> -> vector<8x128xf32>
      %88 = arith.mulf %82, %86 : vector<8x128xf32>
      %89 = math.log %88 : vector<8x128xf32>
      %90 = arith.mulf %80, %87 : vector<8x128xf32>
      %91 = arith.mulf %82, %86 : vector<8x128xf32>
      %92 = arith.maximumf %90, %91 : vector<8x128xf32>
      %cst_86 = arith.constant 2.000000e+00 : f32
      %93 = vector.broadcast %cst_86 : f32 to vector<8x128xf32>
      %94 = arith.select %76, %92, %93 : vector<8x128xi1>, vector<8x128xf32>
      %95 = arith.subf %86, %87 : vector<8x128xf32>
      %96 = math.absf %95 : vector<8x128xf32>
      %97 = arith.mulf %89, %89 : vector<8x128xf32>
      %98 = arith.mulf %84, %87 : vector<8x128xf32>
      %99 = arith.mulf %85, %87 : vector<8x128xf32>
      %cst_87 = arith.constant 1.250000e+00 : f32
      %100 = vector.broadcast %cst_87 : f32 to vector<8x128xf32>
      %101 = arith.cmpf olt, %94, %100 : vector<8x128xf32>
      %102 = arith.extui %101 : vector<8x128xi1> to vector<8x128xi32>
      %103 = arith.sitofp %102 : vector<8x128xi32> to vector<8x128xf32>
      %cst_88 = arith.constant 1.562500e+00 : f32
      %104 = vector.broadcast %cst_88 : f32 to vector<8x128xf32>
      %105 = arith.cmpf olt, %94, %104 : vector<8x128xf32>
      %106 = arith.extui %105 : vector<8x128xi1> to vector<8x128xi32>
      %107 = arith.sitofp %106 : vector<8x128xi32> to vector<8x128xf32>
      %cst_89 = arith.constant 1.953125 : f32
      %108 = vector.broadcast %cst_89 : f32 to vector<8x128xf32>
      %109 = arith.cmpf olt, %94, %108 : vector<8x128xf32>
      %110 = arith.extui %109 : vector<8x128xi1> to vector<8x128xi32>
      %111 = arith.sitofp %110 : vector<8x128xi32> to vector<8x128xf32>
      %112 = arith.mulf %96, %96 : vector<8x128xf32>
      %113 = arith.addf %arg6, %78 : vector<8x128xf32>
      %114 = arith.addf %arg7, %85 : vector<8x128xf32>
      %115 = arith.addf %arg8, %84 : vector<8x128xf32>
      %116 = arith.addf %arg9, %97 : vector<8x128xf32>
      %117 = arith.addf %arg10, %98 : vector<8x128xf32>
      %118 = arith.addf %arg11, %99 : vector<8x128xf32>
      %119 = arith.addf %arg12, %103 : vector<8x128xf32>
      %120 = arith.addf %arg13, %107 : vector<8x128xf32>
      %121 = arith.addf %arg14, %111 : vector<8x128xf32>
      %122 = arith.addf %arg15, %112 : vector<8x128xf32>
      %123 = arith.addf %arg16, %96 : vector<8x128xf32>
      scf.yield %113, %114, %115, %116, %117, %118, %119, %120, %121, %122, %123 : vector<8x128xf32>, vector<8x128xf32>, vector<8x128xf32>, vector<8x128xf32>, vector<8x128xf32>, vector<8x128xf32>, vector<8x128xf32>, vector<8x128xf32>, vector<8x128xf32>, vector<8x128xf32>, vector<8x128xf32>
    }
    %c2_i32_36 = arith.constant 2 : i32
    %c0_37 = arith.constant 0 : index
    %c0_38 = arith.constant 0 : index
    %c0_39 = arith.constant 0 : index
    %c0_40 = arith.constant 0 : index
    %31 = vector.load %arg4[%c0_37, %c0_38, %c0_39, %c0_40] : memref<1x11x8x128xf32, #tpu.memory_space<vmem>>, vector<1x1x8x128xf32>
    %32 = vector.shape_cast %31 : vector<1x1x8x128xf32> to vector<8x128xf32>
    %33 = vector.shape_cast %30#0 : vector<8x128xf32> to vector<1x1x8x128xf32>
    tpu.vector_store %arg4[%c0_37, %c0_38, %c0_39, %c0_40], %33 {strides = array<i32>} : memref<1x11x8x128xf32, #tpu.memory_space<vmem>>, vector<1x1x8x128xf32>,
    %c0_41 = arith.constant 0 : index
    %c1_42 = arith.constant 1 : index
    %c0_43 = arith.constant 0 : index
    %c0_44 = arith.constant 0 : index
    %34 = vector.load %arg4[%c0_41, %c1_42, %c0_43, %c0_44] : memref<1x11x8x128xf32, #tpu.memory_space<vmem>>, vector<1x1x8x128xf32>
    %35 = vector.shape_cast %34 : vector<1x1x8x128xf32> to vector<8x128xf32>
    %36 = vector.shape_cast %30#1 : vector<8x128xf32> to vector<1x1x8x128xf32>
    tpu.vector_store %arg4[%c0_41, %c1_42, %c0_43, %c0_44], %36 {strides = array<i32>} : memref<1x11x8x128xf32, #tpu.memory_space<vmem>>, vector<1x1x8x128xf32>,
    %c0_45 = arith.constant 0 : index
    %c2_46 = arith.constant 2 : index
    %c0_47 = arith.constant 0 : index
    %c0_48 = arith.constant 0 : index
    %37 = vector.load %arg4[%c0_45, %c2_46, %c0_47, %c0_48] : memref<1x11x8x128xf32, #tpu.memory_space<vmem>>, vector<1x1x8x128xf32>
    %38 = vector.shape_cast %37 : vector<1x1x8x128xf32> to vector<8x128xf32>
    %39 = vector.shape_cast %30#2 : vector<8x128xf32> to vector<1x1x8x128xf32>
    tpu.vector_store %arg4[%c0_45, %c2_46, %c0_47, %c0_48], %39 {strides = array<i32>} : memref<1x11x8x128xf32, #tpu.memory_space<vmem>>, vector<1x1x8x128xf32>,
    %c0_49 = arith.constant 0 : index
    %c3_50 = arith.constant 3 : index
    %c0_51 = arith.constant 0 : index
    %c0_52 = arith.constant 0 : index
    %40 = vector.load %arg4[%c0_49, %c3_50, %c0_51, %c0_52] : memref<1x11x8x128xf32, #tpu.memory_space<vmem>>, vector<1x1x8x128xf32>
    %41 = vector.shape_cast %40 : vector<1x1x8x128xf32> to vector<8x128xf32>
    %42 = vector.shape_cast %30#3 : vector<8x128xf32> to vector<1x1x8x128xf32>
    tpu.vector_store %arg4[%c0_49, %c3_50, %c0_51, %c0_52], %42 {strides = array<i32>} : memref<1x11x8x128xf32, #tpu.memory_space<vmem>>, vector<1x1x8x128xf32>,
    %c0_53 = arith.constant 0 : index
    %c4_54 = arith.constant 4 : index
    %c0_55 = arith.constant 0 : index
    %c0_56 = arith.constant 0 : index
    %43 = vector.load %arg4[%c0_53, %c4_54, %c0_55, %c0_56] : memref<1x11x8x128xf32, #tpu.memory_space<vmem>>, vector<1x1x8x128xf32>
    %44 = vector.shape_cast %43 : vector<1x1x8x128xf32> to vector<8x128xf32>
    %45 = vector.shape_cast %30#4 : vector<8x128xf32> to vector<1x1x8x128xf32>
    tpu.vector_store %arg4[%c0_53, %c4_54, %c0_55, %c0_56], %45 {strides = array<i32>} : memref<1x11x8x128xf32, #tpu.memory_space<vmem>>, vector<1x1x8x128xf32>,
    %c0_57 = arith.constant 0 : index
    %c5_58 = arith.constant 5 : index
    %c0_59 = arith.constant 0 : index
    %c0_60 = arith.constant 0 : index
    %46 = vector.load %arg4[%c0_57, %c5_58, %c0_59, %c0_60] : memref<1x11x8x128xf32, #tpu.memory_space<vmem>>, vector<1x1x8x128xf32>
    %47 = vector.shape_cast %46 : vector<1x1x8x128xf32> to vector<8x128xf32>
    %48 = vector.shape_cast %30#5 : vector<8x128xf32> to vector<1x1x8x128xf32>
    tpu.vector_store %arg4[%c0_57, %c5_58, %c0_59, %c0_60], %48 {strides = array<i32>} : memref<1x11x8x128xf32, #tpu.memory_space<vmem>>, vector<1x1x8x128xf32>,
    %c0_61 = arith.constant 0 : index
    %c6_62 = arith.constant 6 : index
    %c0_63 = arith.constant 0 : index
    %c0_64 = arith.constant 0 : index
    %49 = vector.load %arg4[%c0_61, %c6_62, %c0_63, %c0_64] : memref<1x11x8x128xf32, #tpu.memory_space<vmem>>, vector<1x1x8x128xf32>
    %50 = vector.shape_cast %49 : vector<1x1x8x128xf32> to vector<8x128xf32>
    %51 = vector.shape_cast %30#6 : vector<8x128xf32> to vector<1x1x8x128xf32>
    tpu.vector_store %arg4[%c0_61, %c6_62, %c0_63, %c0_64], %51 {strides = array<i32>} : memref<1x11x8x128xf32, #tpu.memory_space<vmem>>, vector<1x1x8x128xf32>,
    %c0_65 = arith.constant 0 : index
    %c7_66 = arith.constant 7 : index
    %c0_67 = arith.constant 0 : index
    %c0_68 = arith.constant 0 : index
    %52 = vector.load %arg4[%c0_65, %c7_66, %c0_67, %c0_68] : memref<1x11x8x128xf32, #tpu.memory_space<vmem>>, vector<1x1x8x128xf32>
    %53 = vector.shape_cast %52 : vector<1x1x8x128xf32> to vector<8x128xf32>
    %54 = vector.shape_cast %30#7 : vector<8x128xf32> to vector<1x1x8x128xf32>
    tpu.vector_store %arg4[%c0_65, %c7_66, %c0_67, %c0_68], %54 {strides = array<i32>} : memref<1x11x8x128xf32, #tpu.memory_space<vmem>>, vector<1x1x8x128xf32>,
    %c0_69 = arith.constant 0 : index
    %c8_70 = arith.constant 8 : index
    %c0_71 = arith.constant 0 : index
    %c0_72 = arith.constant 0 : index
    %55 = vector.load %arg4[%c0_69, %c8_70, %c0_71, %c0_72] : memref<1x11x8x128xf32, #tpu.memory_space<vmem>>, vector<1x1x8x128xf32>
    %56 = vector.shape_cast %55 : vector<1x1x8x128xf32> to vector<8x128xf32>
    %57 = vector.shape_cast %30#8 : vector<8x128xf32> to vector<1x1x8x128xf32>
    tpu.vector_store %arg4[%c0_69, %c8_70, %c0_71, %c0_72], %57 {strides = array<i32>} : memref<1x11x8x128xf32, #tpu.memory_space<vmem>>, vector<1x1x8x128xf32>,
    %c0_73 = arith.constant 0 : index
    %c9_74 = arith.constant 9 : index
    %c0_75 = arith.constant 0 : index
    %c0_76 = arith.constant 0 : index
    %58 = vector.load %arg4[%c0_73, %c9_74, %c0_75, %c0_76] : memref<1x11x8x128xf32, #tpu.memory_space<vmem>>, vector<1x1x8x128xf32>
    %59 = vector.shape_cast %58 : vector<1x1x8x128xf32> to vector<8x128xf32>
    %60 = vector.shape_cast %30#9 : vector<8x128xf32> to vector<1x1x8x128xf32>
    tpu.vector_store %arg4[%c0_73, %c9_74, %c0_75, %c0_76], %60 {strides = array<i32>} : memref<1x11x8x128xf32, #tpu.memory_space<vmem>>, vector<1x1x8x128xf32>,
    %c0_77 = arith.constant 0 : index
    %c10_78 = arith.constant 10 : index
    %c0_79 = arith.constant 0 : index
    %c0_80 = arith.constant 0 : index
    %61 = vector.load %arg4[%c0_77, %c10_78, %c0_79, %c0_80] : memref<1x11x8x128xf32, #tpu.memory_space<vmem>>, vector<1x1x8x128xf32>
    %62 = vector.shape_cast %61 : vector<1x1x8x128xf32> to vector<8x128xf32>
    %63 = vector.shape_cast %30#10 : vector<8x128xf32> to vector<1x1x8x128xf32>
    tpu.vector_store %arg4[%c0_77, %c10_78, %c0_79, %c0_80], %63 {strides = array<i32>} : memref<1x11x8x128xf32, #tpu.memory_space<vmem>>, vector<1x1x8x128xf32>,
    return
  }
  func.func @transform_0(%arg0: i32, %arg1: i32) -> (i32, i32) {
    %c1_i32 = arith.constant 1 : i32
    %0 = arith.muli %arg0, %c1_i32 : i32
    %1 = arith.addi %0, %arg1 : i32
    %c0_i32 = arith.constant 0 : i32
    %2 = arith.minsi %1, %c0_i32 : i32
    %c0_i32_0 = arith.constant 0 : i32
    %c0_i32_1 = arith.constant 0 : i32
    return %2, %c0_i32_0 : i32, i32
  }
  func.func @transform_1(%arg0: i32, %arg1: i32) -> (i32, i32) {
    %c1_i32 = arith.constant 1 : i32
    %0 = arith.muli %arg0, %c1_i32 : i32
    %1 = arith.addi %0, %arg1 : i32
    %c0_i32 = arith.constant 0 : i32
    %2 = arith.minsi %1, %c0_i32 : i32
    %c0_i32_0 = arith.constant 0 : i32
    %c0_i32_1 = arith.constant 0 : i32
    return %2, %c0_i32_0 : i32, i32
  }
  func.func @transform_2(%arg0: i32, %arg1: i32) -> (i32, i32, i32, i32) {
    %c0_i32 = arith.constant 0 : i32
    %c0_i32_0 = arith.constant 0 : i32
    %c0_i32_1 = arith.constant 0 : i32
    %c0_i32_2 = arith.constant 0 : i32
    return %arg0, %c0_i32, %c0_i32_0, %c0_i32_1 : i32, i32, i32, i32
  }
}

</mosaic_0001>

<bundles_post_ra>
// kernel: tpu_custom_call.1
= control target key start
LH: loop header
LB: loop body
LE: loop exit
PB: predicated region body
PF: predicated region fallthrough
CT: control target
= control target key end

     0   :  { %7 = vsyncpa [#allocation3], 0  ;;  %s672_s0 = inlined_call_operand.hbm [shape: f32[16,128], index: 0, kind: input, shape index: {}]   ;;  %s673_s1 = inlined_call_operand.hbm [shape: f32[16,128], index: 1, kind: input, shape index: {}]   ;;  %s674_s2 = inlined_call_operand.hbm [shape: f32[1,11,8,128], index: 2, kind: output, shape index: {}]  }
   0x1   :  { %8 = vsyncpa [#allocation6], 0 }
   0x2   :  { %9 = vsyncpa [#allocation4], 0  ;;  %s526_s9 = smov [#allocation2]   ;;  %s358_s13 = scalar_lea.hbm %s672_s0, 256 }
   0x3   :  { %s21_s10 = sshll.u32 %s526_s9, 4  ;;  %p359_p0 = scmp.ne.s32.totalorder %s672_s0, %s358_s13  ;;  %s22_s10 = int_to_ptr.vmem [resolvable:$true] %s21_s10 }
   0x4   :  { %p362_p1 = scmp.lt.u32.totalorder %s358_s13, %s672_s0 }
   0x6   :  { %p364_p2 = pnand %p362_p1, %p359_p0 }
   0x8   :  { %367 = shalt.err (!%p364_p2)
}
   0x9   :  { %s368_s18 = scalar_lea.vmem %s22_s10, 256  ;;  %p373_p4 = scmp.lt.s32.totalorder %s22_s10, %s22_s10 }
   0xa   :  { %p369_p3 = scmp.ne.s32.totalorder %s22_s10, %s368_s18  ;;  %p374_p5 = scmp.lt.s32.totalorder %s368_s18, %s368_s18 }
   0xc   :  { %p375_p6 = por %p374_p5, %p373_p4 }
   0xe   :  { %p376_p7 = pnand %p375_p6, %p369_p3 }
  0x10   :  { %379 = shalt.err (!%p376_p7)
}
  0x11   :  { %s527_s19 = smov 128   ;;  %s528_s20 = smov 8  }
  0x12   :  { %27 = dma.hbm_to_vmem [thread:$0]  %s672_s0, 256, %s22_s10, [#allocation3], %s527_s19, %s527_s19, %s528_s20  }
  0x13   :  { %s529_s23 = smov [#allocation5]   ;;  %s380_s27 = scalar_lea.hbm %s673_s1, 256 }
  0x14   :  { %s39_s24 = sshll.u32 %s529_s23, 4  ;;  %p381_p8 = scmp.ne.s32.totalorder %s673_s1, %s380_s27  ;;  %s40_s24 = int_to_ptr.vmem [resolvable:$true] %s39_s24 }
  0x15   :  { %p384_p9 = scmp.lt.u32.totalorder %s380_s27, %s673_s1 }
  0x17   :  { %p386_p10 = pnand %p384_p9, %p381_p8 }
  0x19   :  { %389 = shalt.err (!%p386_p10)
}
  0x1a   :  { %s390_s4 = scalar_lea.vmem %s40_s24, 256  ;;  %p395_p12 = scmp.lt.s32.totalorder %s40_s24, %s40_s24 }
  0x1b   :  { %p391_p11 = scmp.ne.s32.totalorder %s40_s24, %s390_s4  ;;  %p396_p13 = scmp.lt.s32.totalorder %s390_s4, %s390_s4 }
  0x1d   :  { %p397_p0 = por %p396_p13, %p395_p12 }
  0x1f   :  { %p398_p1 = pnand %p397_p0, %p391_p11 }
  0x21   :  { %401 = shalt.err (!%p398_p1)
}
  0x22   :  { %45 = dma.hbm_to_vmem [thread:$0]  %s673_s1, 256, %s40_s24, [#allocation6], %s527_s19, %s527_s19, %s528_s20  }
  0x23   :  { %472 = dma.done.wait [#allocation3], 256  }
  0x24   :  { %473 = vsyncadd [#allocation3], 4294967040 }
  0x25   :  { %474 = dma.done.wait [#allocation6], 256  }
  0x26   :  { %475 = vsyncadd [#allocation6], 4294967040  ;;  %v77_v0 = vlaneseq  ;;  %v530_v1 = vmov 0.0   ;;  %v580_v3 = vmov 0.0   ;;  %v582_v4 = vmov 0.0   ;;  %s602_s1 = smov 0  }
  0x27   :  { %64 = vst [vmem:[#allocation7] sm:$0xff] %v530_v1  ;;  %65 = vst [vmem:[#allocation7 + $0x8] sm:$0xff] %v530_v1  ;;  %v584_v5 = vmov 0.0   ;;  %v586_v6 = vmov 0.0   ;;  %v588_v7 = vmov 0.0   ;;  %v590_v8 = vmov 0.0  }
  0x28   :  { %66 = vst [vmem:[#allocation7 + $0x10] sm:$0xff] %v530_v1  ;;  %67 = vst [vmem:[#allocation7 + $0x18] sm:$0xff] %v530_v1  ;;  %v578_v2 = vshrl.u32 %v77_v0, 7  ;;  %v592_v9 = vmov 0.0   ;;  %v594_v10 = vmov 0.0   ;;  %v596_v11 = vmov 0.0  }
  0x29   :  { %68 = vst [vmem:[#allocation7 + $0x20] sm:$0xff] %v530_v1  ;;  %69 = vst [vmem:[#allocation7 + $0x28] sm:$0xff] %v530_v1  ;;  %v598_v12 = vmov 0.0   ;;  %v600_v13 = vmov 0.0  }
  0x2a   :  { %70 = vst [vmem:[#allocation7 + $0x30] sm:$0xff] %v530_v1  ;;  %71 = vst [vmem:[#allocation7 + $0x38] sm:$0xff] %v530_v1 }
  0x2b   :  { %72 = vst [vmem:[#allocation7 + $0x40] sm:$0xff] %v530_v1  ;;  %73 = vst [vmem:[#allocation7 + $0x48] sm:$0xff] %v530_v1 }
  0x2c   :  { %74 = vst [vmem:[#allocation7 + $0x50] sm:$0xff] %v530_v1 }
  0x2d LB: > { %s244_s6 = sshll.u32 %s524_s1, 3  ;;  %v531_v18 = vmov 0.0   ;;  %s105_s1 = sadd.s32 1, %s524_s1   ;;  %s524_s1 = sphi %s602_s1, %s105_s1   ;;  %v520_v13 = vphi %v600_v13, %v687_v13   ;;  %v516_v12 = vphi %v598_v12, %v686_v12   ;;  %v512_v11 = vphi %v596_v11, %v685_v11   ;;  %v508_v10 = vphi %v594_v10, %v684_v10   ;;  %v504_v9 = vphi %v592_v9, %v683_v9   ;;  %v500_v8 = vphi %v590_v8, %v682_v8   ;;  %v496_v7 = vphi %v588_v7, %v681_v7   ;;  %v492_v6 = vphi %v586_v6, %v680_v6   ;;  %v488_v5 = vphi %v584_v5, %v679_v5   ;;  %v484_v4 = vphi %v582_v4, %v678_v4   ;;  %v480_v3 = vphi %v580_v3, %v677_v3  }
  0x2e   : > { %s120_s7 = scalar_lea.vmem [#allocation5], %s244_s6  ;;  %s123_s8 = ssub.s32 16, %s244_s6 }
  0x2f   : > { %v121_v14 = vld [vmem:[%s120_s7] sm:$0xff]  ;;  %s118_s9 = scalar_lea.vmem [#allocation2], %s244_s6  ;;  %v124_v16 = vstv %s123_s8  ;;  %p102_p2 = scmp.ge.s32.totalorder %s105_s1, 2  }
  0x30   : > { %v119_v15 = vld [vmem:[%s118_s9] sm:$0xff]  ;;  %vm126_vm0 = vcmp.gt.f32.partialorder %v121_v14, 0.001  ;;  %vm125_vm1 = vcmp.lt.s32.totalorder %v578_v2, %v124_v16  ;;  %s532_s10 = smov (%p102_p2), [#allocation7]  }
  0x31   : > { %vm620_vm2 = vmand %vm126_vm0, %vm125_vm1  ;;  %s185_s11 = sshll.u32 (%p102_p2), %s532_s10, 4  ;;  %s186_s11 = int_to_ptr.vmem [resolvable:$true] %s185_s11 }
  0x32   : > { %v245_v19 = vsel %vm620_vm2, 1.0, %v531_v18  ;;  %v130_v20 = vsel %vm620_vm2, %v119_v15, 1.0  ;;  %v131_v21 = vsel %vm620_vm2, %v121_v14, 1.0  ;;  %s402_s12 = scalar_lea.vmem (%p102_p2), %s186_s11, 1408  ;;  %p407_p4 = scmp.lt.s32.totalorder (%p102_p2), %s186_s11, %s186_s11 }
  0x33   : > { %v132_v22 = vsub.f32 %v130_v20, %v131_v21  ;;  %352 = vrcp.f32 %v130_v20  ;;  %v158_v23 = vadd.f32 %v520_v13, %v245_v19   ;;  %p403_p3 = scmp.ne.s32.totalorder (%p102_p2), %s186_s11, %s402_s12  ;;  %p408_p5 = scmp.lt.s32.totalorder (%p102_p2), %s402_s12, %s402_s12 }
  0x34   : > { %354 = vrcp.f32 %v131_v21 }
  0x35   : > { %v133_v24 = vand.u32 2147483647, %v132_v22  ;;  %v134_v25 = vmul.f32 %v132_v22, %v132_v22  ;;  %v687_v13 = vmov %v158_v23  ;;  %169 = vst [vmem:[#allocation7] sm:$0xff] (%p102_p2), %v158_v23  ;;  %p409_p6 = por (%p102_p2), %p408_p5, %p407_p4 }
  0x37   : > { %v159_v26 = vadd.f32 %v516_v12, %v134_v25   ;;  %v160_v27 = vadd.f32 %v512_v11, %v133_v24   ;;  %p410_p7 = pnand (%p102_p2), %p409_p6, %p403_p3 }
  0x39   : > { %v685_v11 = vmov %v160_v27  ;;  %v686_v12 = vmov %v159_v26  ;;  %170 = vst [vmem:[#allocation7 + $0x8] sm:$0xff] (%p102_p2), %v159_v26  ;;  %171 = vst [vmem:[#allocation7 + $0x10] sm:$0xff] (%p102_p2), %v160_v27 }
  0x3d   : > { %v353_v28 = vpop.eup %352 }
  0x3e   : > { %v355_v29 = vpop.eup %354  ;;  %v137_v30 = vmul.f32 %v353_v28, %v131_v21 }
  0x3f   : > { %v140_v31 = vmul.f32 %v355_v29, %v130_v20  ;;  %v143_v32 = vsub.f32 %v353_v28, %v355_v29  ;;  %v146_v33 = vmul.f32 %v355_v29, %v133_v24  ;;  %v147_v34 = vmul.f32 %v355_v29, %v134_v25 }
  0x40   : > { %356 = vlog2.f32 %v137_v30 }
  0x41   : > { %v141_v35 = vmax.f32 %v140_v31, %v137_v30  ;;  %v144_v36 = vand.u32 2147483647, %v143_v32  ;;  %v162_v37 = vadd.f32 %v504_v9, %v146_v33   ;;  %v163_v38 = vadd.f32 %v500_v8, %v147_v34  }
  0x43   : > { %v142_v39 = vsel %vm620_vm2, %v141_v35, 2.0  ;;  %v157_v40 = vmul.f32 %v144_v36, %v144_v36  ;;  %v168_v41 = vadd.f32 %v480_v3, %v144_v36   ;;  %v682_v8 = vmov %v163_v38  ;;  %173 = vst [vmem:[#allocation7 + $0x20] sm:$0xff] (%p102_p2), %v162_v37  ;;  %174 = vst [vmem:[#allocation7 + $0x28] sm:$0xff] (%p102_p2), %v163_v38 }
  0x44   : > { %vm148_vm3 = vcmp.lt.f32.partialorder %v142_v39, 1.25  ;;  %vm151_vm4 = vcmp.lt.f32.partialorder %v142_v39, 1.5625  ;;  %vm154_vm5 = vcmp.lt.f32.partialorder %v142_v39, 1.953125  ;;  %v683_v9 = vmov %v162_v37 }
  0x45   : > { %v246_v42 = vsel %vm148_vm3, 1.0, %v531_v18  ;;  %v247_v43 = vsel %vm151_vm4, 1.0, %v531_v18  ;;  %v248_v44 = vsel %vm154_vm5, 1.0, %v531_v18  ;;  %v167_v45 = vadd.f32 %v484_v4, %v157_v40   ;;  %179 = vst [vmem:[#allocation7 + $0x50] sm:$0xff] (%p102_p2), %v168_v41 }
  0x46   : > { %v164_v46 = vadd.f32 %v496_v7, %v246_v42   ;;  %v165_v47 = vadd.f32 %v492_v6, %v247_v43   ;;  %v166_v48 = vadd.f32 %v488_v5, %v248_v44   ;;  %v677_v3 = vmov %v168_v41 }
  0x47   : > { %v678_v4 = vmov %v167_v45  ;;  %178 = vst [vmem:[#allocation7 + $0x48] sm:$0xff] (%p102_p2), %v167_v45 }
  0x48   : > { %v679_v5 = vmov %v166_v48  ;;  %v680_v6 = vmov %v165_v47  ;;  %v681_v7 = vmov %v164_v46  ;;  %175 = vst [vmem:[#allocation7 + $0x30] sm:$0xff] (%p102_p2), %v164_v46  ;;  %176 = vst [vmem:[#allocation7 + $0x38] sm:$0xff] (%p102_p2), %v165_v47 }
  0x49   :  { %177 = vst [vmem:[#allocation7 + $0x40] sm:$0xff] (%p102_p2), %v166_v48 }
  0x4a   : > { %v357_v49 = vpop.eup %356 }
  0x4b   : > { %v139_v50 = vmul.f32 0.6931472, %v357_v49  ;;  %104 = sbr.rel (!%p102_p2) target bundleno = 45 (0x2d), region = 61 }
  0x4d   : > { %v145_v51 = vmul.f32 %v139_v50, %v139_v50 }
  0x4f   : > { %v161_v52 = vadd.f32 %v508_v10, %v145_v51  }
  0x51   : > { %v684_v10 = vmov %v161_v52  ;;  %172 = vst [vmem:[#allocation7 + $0x18] sm:$0xff] (%p102_p2), %v161_v52 }
  0x52   :  { %413 = shalt.err (!%p410_p7)
}
  0x53   :  { %s414_s15 = scalar_lea.hbm %s674_s2, 1408 }
  0x54   :  { %p415_p8 = scmp.ne.s32.totalorder %s674_s2, %s414_s15  ;;  %p418_p9 = scmp.lt.u32.totalorder %s414_s15, %s674_s2 }
  0x56   :  { %p420_p10 = pnand %p418_p9, %p415_p8 }
  0x58   :  { %423 = shalt.err (!%p420_p10)
}
  0x59   :  { %191 = dma.vmem_to_hbm [thread:$0]  %s186_s11, 1408, %s674_s2, [#allocation4], %s527_s19, %s527_s19, %s528_s20  }
  0x5a   :  { %476 = dma.done.wait [#allocation4], 1408  }
  0x5b   :  { %477 = vsyncadd [#allocation4], 4294965888 }
  0x5c   :  { %195 = vsyncpa [#allocation3], 1 }
  0x5d   :  { %196 = vsyncpa [#allocation6], 1 }
  0x5e   :  { %197 = vsyncpa [#allocation4], 1 }

</bundles_post_ra>
